<compile_context>
chip_gen: v6e
topology: v6e:2x2x1
jax: 0.10.0
libtpu: 0.0.40
codegen_flags: <defaults>
</compile_context>

<pallas_src>
import jax
import jax.numpy as jnp
from jax.experimental import pallas as pl
from jax.experimental.pallas import tpu as pltpu


def _pick_batch_tile(B, block_b):
    """Sublane-aligned batch tile, preferring >= 2 grid steps when possible."""
    if B % 8 == 0:
        tb = min(block_b, B)
        while tb >= 16 and (B % tb != 0 or B // tb < 2):
            tb -= 8
        if B % tb == 0:
            return tb
    return B  # tiny / odd batch: single full-batch block (always legal)


def make_cross_attention(dim, num_heads=8, qk_scale=None, block_b=64,
                         vmem_limit_bytes=48 * 1024 * 1024):
    head_dim = dim // num_heads
    assert head_dim * num_heads == dim, "dim must be divisible by num_heads"
    scale = qk_scale or head_dim ** (-0.5)

    def kernel(xq_ref, xf_ref, wq_ref, wk_ref, wv_ref, wp_ref, bp_ref,
               sel_ref, selT_ref, red_ref, o_ref):
        f32 = jnp.float32
        bf16 = jnp.bfloat16
        TB, C = xq_ref.shape
        TBN = xf_ref.shape[0]
        N = TBN // TB
        H = num_heads

        xq = xq_ref[...]                       # (TB, C)     bf16 query tokens
        xf = xf_ref[...]                       # (TB*N, C)   bf16 all tokens

        # ---- projections: bf16 x bf16 MXU matmuls, f32 acc (qkv_bias=False)
        q = jnp.dot(xq, wq_ref[...], preferred_element_type=f32)   # (TB, C)
        k = jnp.dot(xf, wk_ref[...], preferred_element_type=f32)   # (TBN, C)
        v = jnp.dot(xf, wv_ref[...], preferred_element_type=f32)   # (TBN, C)

        # ---- per-head scores: q*k elementwise (VPU), head-segment reduce on
        # the MXU via a 0/1 selector; scale applied in f32 on the narrow
        # (TBN, H) result rather than baked into a bf16 constant.
        # NOTE: on v5e (no bf16 VALU) keep q/k in f32 here and only cast the
        # product at the matmul boundary.
        # TODO(synk): profile-gated -- if bundle dumps show the MXU slot
        # saturated at large C, replace this selector matmul with an XLU
        # lane-segment reduce qk.reshape(TBN, H, head_dim).sum(-1).
        qb = q.astype(bf16)
        kb = k.reshape(TB, N, C).astype(bf16)
        qk = (qb[:, None, :] * kb).reshape(TBN, C)                  # bf16
        scores = jnp.dot(qk, sel_ref[...],
                         preferred_element_type=f32) * scale        # (TBN, H)

        # ---- numerically-stable softmax over the key axis (narrow: H lanes)
        s3 = scores.reshape(TB, N, H)
        m = jnp.max(s3, axis=1, keepdims=True)                      # (TB,1,H)
        e3 = jnp.exp(s3 - m)                                        # (TB,N,H)
        denom = jnp.sum(e3, axis=1, keepdims=True)                  # (TB,1,H)
        p = (e3 * pl.reciprocal(denom, approx=True)).reshape(TBN, H)
        # attn_drop(p=0.0) / proj_drop(p=0.0) are identity in eval -> no-op.

        # ---- broadcast attn over head_dim channels (tiny MXU matmul),
        # weight v, then reduce over the key axis with the 0/1 group matrix.
        attn_full = jnp.dot(p.astype(bf16), selT_ref[...],
                            preferred_element_type=f32)             # (TBN, C)
        av = (attn_full * v).astype(bf16)                           # (TBN, C)
        out = jnp.dot(red_ref[...], av, preferred_element_type=f32)  # (TB, C)

        # ---- output projection + bias: cast the activation, weight stays bf16
        y = jnp.dot(out.astype(bf16), wp_ref[...],
                    preferred_element_type=f32) + bp_ref[...]       # (TB, C)
        o_ref[...] = y.astype(o_ref.dtype)

    def apply(x, wq_t, wk_t, wv_t, wp_t, bp):
        B, N, C = x.shape
        assert C == dim
        H, hd = num_heads, head_dim
        TB = _pick_batch_tile(B, block_b)
        grid_b = B // TB

        bf16 = jnp.bfloat16
        xq = x[:, 0, :].astype(bf16)               # (B, C)   query token/batch
        xf = x.reshape(B * N, C).astype(bf16)      # (B*N, C) flattened tokens
        wq_b = wq_t.astype(bf16)
        wk_b = wk_t.astype(bf16)
        wv_b = wv_t.astype(bf16)
        wp_b = wp_t.astype(bf16)
        bp2 = bp.reshape(1, C).astype(jnp.float32)

        # grid-invariant 0/1 constants (built once, outside the grid loop)
        sel = (jnp.arange(C)[:, None] // hd ==
               jnp.arange(H)[None, :]).astype(bf16)                  # (C, H)
        selT = jnp.transpose(sel)                                    # (H, C)
        red = (jnp.arange(TB)[:, None] ==
               jnp.arange(TB * N)[None, :] // N).astype(bf16)        # (TB,TB*N)

        resident = pl.Buffered(1)   # single VMEM buffer for invariant operands
        w_spec = pl.BlockSpec((C, C), lambda b: (0, 0), pipeline_mode=resident)

        y2d = pl.pallas_call(
            kernel,
            out_shape=jax.ShapeDtypeStruct((B, C), x.dtype),
            grid=(grid_b,),
            in_specs=[
                pl.BlockSpec((TB, C), lambda b: (b, 0)),
                pl.BlockSpec((TB * N, C), lambda b: (b, 0)),
                w_spec, w_spec, w_spec, w_spec,
                pl.BlockSpec((1, C), lambda b: (0, 0), pipeline_mode=resident),
                pl.BlockSpec((C, H), lambda b: (0, 0), pipeline_mode=resident),
                pl.BlockSpec((H, C), lambda b: (0, 0), pipeline_mode=resident),
                pl.BlockSpec((TB, TB * N), lambda b: (0, 0),
                             pipeline_mode=resident),
            ],
            out_specs=pl.BlockSpec((TB, C), lambda b: (b, 0)),
            compiler_params=pltpu.CompilerParams(
                dimension_semantics=("parallel",),
                vmem_limit_bytes=vmem_limit_bytes,
            ),
        )(xq, xf, wq_b, wk_b, wv_b, wp_b, bp2, sel, selT, red)
        return y2d.reshape(B, 1, C)

    return apply, scale


def cross_attention_ref(x, wq_t, wk_t, wv_t, wp_t, bp, num_heads, scale):
    """Pure-JAX reference mirroring the PyTorch forward exactly (f32 math)."""
    B, N, C = x.shape
    hd = C // num_heads
    q = (x[:, 0:1, :] @ wq_t).reshape(B, 1, num_heads, hd).transpose(0, 2, 1, 3)
    k = (x @ wk_t).reshape(B, N, num_heads, hd).transpose(0, 2, 1, 3)
    v = (x @ wv_t).reshape(B, N, num_heads, hd).transpose(0, 2, 1, 3)
    attn = (q @ k.transpose(0, 1, 3, 2)) * scale
    attn = jax.nn.softmax(attn, axis=-1)
    out = (attn @ v).transpose(0, 2, 1, 3).reshape(B, 1, C)
    return out @ wp_t + bp[None, None, :]


if __name__ == "__main__":
    B, N, C, H = 2, 8, 32, 8
    key = jax.random.PRNGKey(0)
    kx, kq, kk, kv, kp, kb = jax.random.split(key, 6)

    x = jax.random.normal(kx, (B, N, C), dtype=jnp.float32)
    # nn.Linear(dim, dim) weights are (out, in); store transposed (in, out).
    wq_t = jax.random.normal(kq, (C, C), dtype=jnp.float32) * 0.05
    wk_t = jax.random.normal(kk, (C, C), dtype=jnp.float32) * 0.05
    wv_t = jax.random.normal(kv, (C, C), dtype=jnp.float32) * 0.05
    wp_t = jax.random.normal(kp, (C, C), dtype=jnp.float32) * 0.05
    bp = jax.random.normal(kb, (C,), dtype=jnp.float32) * 0.05

    apply_fn, scale = make_cross_attention(C, num_heads=H)
    out = jax.block_until_ready(apply_fn(x, wq_t, wk_t, wv_t, wp_t, bp))

    # Reference at matching input precision: the kernel intentionally
    # quantizes x and the weights to bf16 (f32 accumulation), so compare
    # against an f32 reference fed the same bf16-quantized inputs.
    q16 = lambda a: a.astype(jnp.bfloat16).astype(jnp.float32)
    ref = cross_attention_ref(q16(x), q16(wq_t), q16(wk_t), q16(wv_t),
                              q16(wp_t), bp, H, scale)

    assert out.shape == (B, 1, C)
    assert jnp.allclose(out, ref, atol=1e-2, rtol=1e-2), "mismatch vs reference"

    print("KERNEL_OK")
</pallas_src>

<mosaic_0001>
module attributes {stable_mosaic.version = 11 : i64} {
  func.func @kernel(%arg0: i32, %arg1: memref<2x32xbf16, #tpu.memory_space<vmem>>, %arg2: memref<16x32xbf16, #tpu.memory_space<vmem>>, %arg3: memref<32x32xbf16, #tpu.memory_space<vmem>>, %arg4: memref<32x32xbf16, #tpu.memory_space<vmem>>, %arg5: memref<32x32xbf16, #tpu.memory_space<vmem>>, %arg6: memref<32x32xbf16, #tpu.memory_space<vmem>>, %arg7: memref<1x32xf32, #tpu.memory_space<vmem>>, %arg8: memref<32x8xbf16, #tpu.memory_space<vmem>>, %arg9: memref<8x32xbf16, #tpu.memory_space<vmem>>, %arg10: memref<2x16xbf16, #tpu.memory_space<vmem>>, %arg11: memref<2x32xf32, #tpu.memory_space<vmem>>) attributes {dimension_semantics = [#tpu.dimension_semantics<parallel>], iteration_bounds = array<i64: 1>, scalar_prefetch = 0 : i64, scratch_operands = 0 : i64, tpu.core_type = #tpu.core_type<tc>, window_params = [{transform_indices = @transform_0, window_bounds = array<i64: 2, 32>}, {transform_indices = @transform_1, window_bounds = array<i64: 16, 32>}, {pipeline_mode = #tpu.pipeline_mode<synchronous>, transform_indices = @transform_2, window_bounds = array<i64: 32, 32>}, {pipeline_mode = #tpu.pipeline_mode<synchronous>, transform_indices = @transform_3, window_bounds = array<i64: 32, 32>}, {pipeline_mode = #tpu.pipeline_mode<synchronous>, transform_indices = @transform_4, window_bounds = array<i64: 32, 32>}, {pipeline_mode = #tpu.pipeline_mode<synchronous>, transform_indices = @transform_5, window_bounds = array<i64: 32, 32>}, {pipeline_mode = #tpu.pipeline_mode<synchronous>, transform_indices = @transform_6, window_bounds = array<i64: 1, 32>}, {pipeline_mode = #tpu.pipeline_mode<synchronous>, transform_indices = @transform_7, window_bounds = array<i64: 32, 8>}, {pipeline_mode = #tpu.pipeline_mode<synchronous>, transform_indices = @transform_8, window_bounds = array<i64: 8, 32>}, {pipeline_mode = #tpu.pipeline_mode<synchronous>, transform_indices = @transform_9, window_bounds = array<i64: 2, 16>}, {transform_indices = @transform_10, window_bounds = array<i64: 2, 32>}]} {
    %c0 = arith.constant 0 : index
    %c0_0 = arith.constant 0 : index
    %0 = vector.load %arg1[%c0, %c0_0] : memref<2x32xbf16, #tpu.memory_space<vmem>>, vector<2x32xbf16>
    %c0_1 = arith.constant 0 : index
    %c0_2 = arith.constant 0 : index
    %1 = vector.load %arg2[%c0_1, %c0_2] : memref<16x32xbf16, #tpu.memory_space<vmem>>, vector<16x32xbf16>
    %c0_3 = arith.constant 0 : index
    %c0_4 = arith.constant 0 : index
    %2 = vector.load %arg3[%c0_3, %c0_4] : memref<32x32xbf16, #tpu.memory_space<vmem>>, vector<32x32xbf16>
    %cst = arith.constant dense<0.000000e+00> : vector<2x32xf32>
    %3 = tpu.matmul %0, %2, %cst {dimension_numbers = #tpu.dot_dimension_numbers<[1], [0], [0], [1], [0, 0, 1, 1], [], []>} : vector<2x32xbf16>, vector<32x32xbf16>, vector<2x32xf32> -> vector<2x32xf32>
    %c0_5 = arith.constant 0 : index
    %c0_6 = arith.constant 0 : index
    %4 = vector.load %arg4[%c0_5, %c0_6] : memref<32x32xbf16, #tpu.memory_space<vmem>>, vector<32x32xbf16>
    %cst_7 = arith.constant dense<0.000000e+00> : vector<16x32xf32>
    %5 = tpu.matmul %1, %4, %cst_7 {dimension_numbers = #tpu.dot_dimension_numbers<[1], [0], [0], [1], [0, 0, 1, 1], [], []>} : vector<16x32xbf16>, vector<32x32xbf16>, vector<16x32xf32> -> vector<16x32xf32>
    %c0_8 = arith.constant 0 : index
    %c0_9 = arith.constant 0 : index
    %6 = vector.load %arg5[%c0_8, %c0_9] : memref<32x32xbf16, #tpu.memory_space<vmem>>, vector<32x32xbf16>
    %cst_10 = arith.constant dense<0.000000e+00> : vector<16x32xf32>
    %7 = tpu.matmul %1, %6, %cst_10 {dimension_numbers = #tpu.dot_dimension_numbers<[1], [0], [0], [1], [0, 0, 1, 1], [], []>} : vector<16x32xbf16>, vector<32x32xbf16>, vector<16x32xf32> -> vector<16x32xf32>
    %8 = arith.truncf %3 : vector<2x32xf32> to vector<2x32xbf16>
    %9 = vector.shape_cast %5 : vector<16x32xf32> to vector<2x8x32xf32>
    %10 = arith.truncf %9 : vector<2x8x32xf32> to vector<2x8x32xbf16>
    %11 = vector.shape_cast %8 : vector<2x32xbf16> to vector<2x1x32xbf16>
    %12 = vector.broadcast %11 : vector<2x1x32xbf16> to vector<2x8x32xbf16>
    %13 = arith.mulf %12, %10 : vector<2x8x32xbf16>
    %14 = vector.shape_cast %13 : vector<2x8x32xbf16> to vector<16x32xbf16>
    %c0_11 = arith.constant 0 : index
    %c0_12 = arith.constant 0 : index
    %15 = vector.load %arg8[%c0_11, %c0_12] : memref<32x8xbf16, #tpu.memory_space<vmem>>, vector<32x8xbf16>
    %cst_13 = arith.constant dense<0.000000e+00> : vector<16x8xf32>
    %16 = tpu.matmul %14, %15, %cst_13 {dimension_numbers = #tpu.dot_dimension_numbers<[1], [0], [0], [1], [0, 0, 1, 1], [], []>} : vector<16x32xbf16>, vector<32x8xbf16>, vector<16x8xf32> -> vector<16x8xf32>
    %cst_14 = arith.constant 5.000000e-01 : f32
    %17 = vector.broadcast %cst_14 : f32 to vector<16x8xf32>
    %18 = arith.mulf %16, %17 : vector<16x8xf32>
    %19 = vector.shape_cast %18 : vector<16x8xf32> to vector<2x8x8xf32>
    %cst_15 = arith.constant dense<0xFF800000> : vector<2x8xf32>
    %20 = vector.multi_reduction <maximumf>, %19, %cst_15 [1] : vector<2x8x8xf32> to vector<2x8xf32>
    %21 = vector.shape_cast %20 : vector<2x8xf32> to vector<2x1x8xf32>
    %22 = vector.broadcast %21 : vector<2x1x8xf32> to vector<2x8x8xf32>
    %23 = arith.subf %19, %22 : vector<2x8x8xf32>
    %24 = math.exp %23 : vector<2x8x8xf32>
    %cst_16 = arith.constant dense<0.000000e+00> : vector<2x8xf32>
    %25 = vector.multi_reduction <add>, %24, %cst_16 [1] : vector<2x8x8xf32> to vector<2x8xf32>
    %26 = vector.shape_cast %25 : vector<2x8xf32> to vector<2x1x8xf32>
    %27 = tpu.reciprocal %26 {approx = true} : vector<2x1x8xf32> -> vector<2x1x8xf32>
    %28 = vector.broadcast %27 : vector<2x1x8xf32> to vector<2x8x8xf32>
    %29 = arith.mulf %24, %28 : vector<2x8x8xf32>
    %30 = vector.shape_cast %29 : vector<2x8x8xf32> to vector<16x8xf32>
    %31 = arith.truncf %30 : vector<16x8xf32> to vector<16x8xbf16>
    %c0_17 = arith.constant 0 : index
    %c0_18 = arith.constant 0 : index
    %32 = vector.load %arg9[%c0_17, %c0_18] : memref<8x32xbf16, #tpu.memory_space<vmem>>, vector<8x32xbf16>
    %cst_19 = arith.constant dense<0.000000e+00> : vector<16x32xf32>
    %33 = tpu.matmul %31, %32, %cst_19 {dimension_numbers = #tpu.dot_dimension_numbers<[1], [0], [0], [1], [0, 0, 1, 1], [], []>} : vector<16x8xbf16>, vector<8x32xbf16>, vector<16x32xf32> -> vector<16x32xf32>
    %34 = arith.mulf %33, %7 : vector<16x32xf32>
    %35 = arith.truncf %34 : vector<16x32xf32> to vector<16x32xbf16>
    %c0_20 = arith.constant 0 : index
    %c0_21 = arith.constant 0 : index
    %36 = vector.load %arg10[%c0_20, %c0_21] : memref<2x16xbf16, #tpu.memory_space<vmem>>, vector<2x16xbf16>
    %cst_22 = arith.constant dense<0.000000e+00> : vector<2x32xf32>
    %37 = tpu.matmul %36, %35, %cst_22 {dimension_numbers = #tpu.dot_dimension_numbers<[1], [0], [0], [1], [0, 0, 1, 1], [], []>} : vector<2x16xbf16>, vector<16x32xbf16>, vector<2x32xf32> -> vector<2x32xf32>
    %38 = arith.truncf %37 : vector<2x32xf32> to vector<2x32xbf16>
    %c0_23 = arith.constant 0 : index
    %c0_24 = arith.constant 0 : index
    %39 = vector.load %arg6[%c0_23, %c0_24] : memref<32x32xbf16, #tpu.memory_space<vmem>>, vector<32x32xbf16>
    %cst_25 = arith.constant dense<0.000000e+00> : vector<2x32xf32>
    %40 = tpu.matmul %38, %39, %cst_25 {dimension_numbers = #tpu.dot_dimension_numbers<[1], [0], [0], [1], [0, 0, 1, 1], [], []>} : vector<2x32xbf16>, vector<32x32xbf16>, vector<2x32xf32> -> vector<2x32xf32>
    %c0_26 = arith.constant 0 : index
    %c0_27 = arith.constant 0 : index
    %41 = vector.load %arg7[%c0_26, %c0_27] : memref<1x32xf32, #tpu.memory_space<vmem>>, vector<1x32xf32>
    %42 = vector.broadcast %41 : vector<1x32xf32> to vector<2x32xf32>
    %43 = arith.addf %40, %42 : vector<2x32xf32>
    %c0_28 = arith.constant 0 : index
    %c0_29 = arith.constant 0 : index
    %44 = vector.load %arg11[%c0_28, %c0_29] : memref<2x32xf32, #tpu.memory_space<vmem>>, vector<2x32xf32>
    tpu.vector_store %arg11[%c0_28, %c0_29], %43 {strides = array<i32>} : memref<2x32xf32, #tpu.memory_space<vmem>>, vector<2x32xf32>,
    return
  }
  func.func @transform_0(%arg0: i32) -> (i32, i32) {
    %c0_i32 = arith.constant 0 : i32
    %c0_i32_0 = arith.constant 0 : i32
    return %arg0, %c0_i32 : i32, i32
  }
  func.func @transform_1(%arg0: i32) -> (i32, i32) {
    %c0_i32 = arith.constant 0 : i32
    %c0_i32_0 = arith.constant 0 : i32
    return %arg0, %c0_i32 : i32, i32
  }
  func.func @transform_2(%arg0: i32) -> (i32, i32) {
    %c0_i32 = arith.constant 0 : i32
    %c0_i32_0 = arith.constant 0 : i32
    %c0_i32_1 = arith.constant 0 : i32
    return %c0_i32, %c0_i32_0 : i32, i32
  }
  func.func @transform_3(%arg0: i32) -> (i32, i32) {
    %c0_i32 = arith.constant 0 : i32
    %c0_i32_0 = arith.constant 0 : i32
    %c0_i32_1 = arith.constant 0 : i32
    return %c0_i32, %c0_i32_0 : i32, i32
  }
  func.func @transform_4(%arg0: i32) -> (i32, i32) {
    %c0_i32 = arith.constant 0 : i32
    %c0_i32_0 = arith.constant 0 : i32
    %c0_i32_1 = arith.constant 0 : i32
    return %c0_i32, %c0_i32_0 : i32, i32
  }
  func.func @transform_5(%arg0: i32) -> (i32, i32) {
    %c0_i32 = arith.constant 0 : i32
    %c0_i32_0 = arith.constant 0 : i32
    %c0_i32_1 = arith.constant 0 : i32
    return %c0_i32, %c0_i32_0 : i32, i32
  }
  func.func @transform_6(%arg0: i32) -> (i32, i32) {
    %c0_i32 = arith.constant 0 : i32
    %c0_i32_0 = arith.constant 0 : i32
    %c0_i32_1 = arith.constant 0 : i32
    return %c0_i32, %c0_i32_0 : i32, i32
  }
  func.func @transform_7(%arg0: i32) -> (i32, i32) {
    %c0_i32 = arith.constant 0 : i32
    %c0_i32_0 = arith.constant 0 : i32
    %c0_i32_1 = arith.constant 0 : i32
    return %c0_i32, %c0_i32_0 : i32, i32
  }
  func.func @transform_8(%arg0: i32) -> (i32, i32) {
    %c0_i32 = arith.constant 0 : i32
    %c0_i32_0 = arith.constant 0 : i32
    %c0_i32_1 = arith.constant 0 : i32
    return %c0_i32, %c0_i32_0 : i32, i32
  }
  func.func @transform_9(%arg0: i32) -> (i32, i32) {
    %c0_i32 = arith.constant 0 : i32
    %c0_i32_0 = arith.constant 0 : i32
    %c0_i32_1 = arith.constant 0 : i32
    return %c0_i32, %c0_i32_0 : i32, i32
  }
  func.func @transform_10(%arg0: i32) -> (i32, i32) {
    %c0_i32 = arith.constant 0 : i32
    %c0_i32_0 = arith.constant 0 : i32
    return %arg0, %c0_i32 : i32, i32
  }
}

</mosaic_0001>

<bundles_post_ra>
// kernel: tpu_custom_call.1
= control target key start
LH: loop header
LB: loop body
LE: loop exit
PB: predicated region body
PF: predicated region fallthrough
CT: control target
= control target key end

     0   :  { %15 = vsyncpa [#allocation3], 0  ;;  %s994_s0 = inlined_call_operand.vmem [shape: bf16[2,32], index: 0, kind: input, shape index: {}]   ;;  %s995_s1 = inlined_call_operand.hbm [shape: bf16[16,32], index: 1, kind: input, shape index: {}]   ;;  %s996_s2 = inlined_call_operand.vmem [shape: bf16[32,32], index: 2, kind: input, shape index: {}]   ;;  %s997_s3 = inlined_call_operand.hbm [shape: bf16[32,32], index: 3, kind: input, shape index: {}]   ;;  %s998_s4 = inlined_call_operand.hbm [shape: bf16[32,32], index: 4, kind: input, shape index: {}]   ;;  %s999_s5 = inlined_call_operand.hbm [shape: bf16[32,32], index: 5, kind: input, shape index: {}]   ;;  %s1000_s6 = inlined_call_operand.vmem [shape: f32[1,32], index: 6, kind: input, shape index: {}]   ;;  %s1001_s7 = inlined_call_operand.vmem [shape: bf16[32,8], index: 7, kind: input, shape index: {}]   ;;  %s1002_s8 = inlined_call_operand.vmem [shape: bf16[8,32], index: 8, kind: input, shape index: {}]   ;;  %s1003_s9 = inlined_call_operand.vmem [shape: bf16[2,16], index: 9, kind: input, shape index: {}]   ;;  %s1004_s10 = inlined_call_operand.hbm [shape: f32[2,32], index: 10, kind: output, shape index: {}]  }
   0x1   :  { %16 = vsyncpa [#allocation6], 0 }
   0x2   :  { %17 = vsyncpa [#allocation9], 0 }
   0x3   :  { %18 = vsyncpa [#allocation4], 0  ;;  %s842_s13 = smov [#allocation5]   ;;  %s843_s15 = smov [#allocation2]  }
   0x4   :  { %s40_s14 = sshll.u32 %s842_s13, 4  ;;  %s26_s16 = sshll.u32 %s843_s15, 4  ;;  %s41_s14 = int_to_ptr.vmem [resolvable:$true] %s40_s14  ;;  %s27_s16 = int_to_ptr.vmem [resolvable:$true] %s26_s16 }
   0x5   :  { %s742_s17 = scalar_lea.vmem %s41_s14, 256  ;;  %p747_p1 = scmp.lt.s32.totalorder %s41_s14, %s41_s14 }
   0x6   :  { %p743_p0 = scmp.ne.s32.totalorder %s41_s14, %s742_s17  ;;  %p748_p2 = scmp.lt.s32.totalorder %s742_s17, %s742_s17 }
   0x8   :  { %p749_p3 = por %p748_p2, %p747_p1 }
   0xa   :  { %p750_p4 = pnand %p749_p3, %p743_p0 }
   0xc   :  { %753 = shalt.err (!%p750_p4)
}
   0xd   :  { %s844_s18 = smov 64   ;;  %s845_s19 = smov 4  }
   0xe   :  { %46 = dma.hbm_to_vmem [thread:$0]  %s997_s3, 256, %s41_s14, [#allocation6], %s844_s18, %s844_s18, %s845_s19  }
   0xf   :  { %s762_s22 = scalar_lea.vmem %s27_s16, 128  ;;  %p767_p6 = scmp.lt.s32.totalorder %s27_s16, %s27_s16 }
  0x10   :  { %p763_p5 = scmp.ne.s32.totalorder %s27_s16, %s762_s22  ;;  %p768_p7 = scmp.lt.s32.totalorder %s762_s22, %s762_s22 }
  0x12   :  { %p769_p8 = por %p768_p7, %p767_p6 }
  0x14   :  { %p770_p9 = pnand %p769_p8, %p763_p5 }
  0x16   :  { %773 = shalt.err (!%p770_p9)
}
  0x17   :  { %32 = dma.hbm_to_vmem [thread:$0]  %s995_s1, 128, %s27_s16, [#allocation3], %s844_s18, %s844_s18, %s845_s19  }
  0x18   :  { %s846_s25 = smov [#allocation7]   ;;  %s847_s27 = smov [#allocation8]  }
  0x19   :  { %s52_s26 = sshll.u32 %s846_s25, 4  ;;  %s64_s28 = sshll.u32 %s847_s27, 4  ;;  %s53_s26 = int_to_ptr.vmem [resolvable:$true] %s52_s26  ;;  %s65_s28 = int_to_ptr.vmem [resolvable:$true] %s64_s28 }
  0x1a   :  { %s782_s3 = scalar_lea.vmem %s53_s26, 256  ;;  %p787_p11 = scmp.lt.s32.totalorder %s53_s26, %s53_s26 }
  0x1b   :  { %p783_p10 = scmp.ne.s32.totalorder %s53_s26, %s782_s3  ;;  %p788_p12 = scmp.lt.s32.totalorder %s782_s3, %s782_s3 }
  0x1d   :  { %p789_p13 = por %p788_p12, %p787_p11 }
  0x1f   :  { %p790_p0 = pnand %p789_p13, %p783_p10 }
  0x21   :  { %793 = shalt.err (!%p790_p0)
}
  0x22   :  { %58 = dma.hbm_to_vmem [thread:$0]  %s998_s4, 256, %s53_s26, [#allocation6], %s844_s18, %s844_s18, %s845_s19  }
  0x23   :  { %s802_s1 = scalar_lea.vmem %s65_s28, 256  ;;  %p807_p2 = scmp.lt.s32.totalorder %s65_s28, %s65_s28 }
  0x24   :  { %p803_p1 = scmp.ne.s32.totalorder %s65_s28, %s802_s1  ;;  %p808_p3 = scmp.lt.s32.totalorder %s802_s1, %s802_s1 }
  0x26   :  { %p809_p4 = por %p808_p3, %p807_p2 }
  0x28   :  { %p810_p5 = pnand %p809_p4, %p803_p1 }
  0x2a   :  { %813 = shalt.err (!%p810_p5)
}
  0x2b   :  { %70 = dma.hbm_to_vmem [thread:$0]  %s999_s5, 256, %s65_s28, [#allocation9], %s844_s18, %s844_s18, %s845_s19  }
  0x2c   :  { %834 = dma.done.wait [#allocation3], 128  }
  0x2d   :  { %835 = vsyncadd [#allocation3], 4294967168 }
  0x2e   :  { %836 = dma.done.wait [#allocation6], 512  }
  0x2f   :  { %837 = vsyncadd [#allocation6], 4294966784 }
  0x30   :  { %838 = dma.done.wait [#allocation9], 256  }
  0x31   :  { %839 = vsyncadd [#allocation9], 4294967040  ;;  %v848_v0 = vmov 0.0   ;;  %vm849_vm0 = vmmov 0   ;;  %v715_v1 = vld [vmem:[%s996_s2 + $0x8] sm:$0xff]   ;;  %v716_v2 = vld [vmem:[%s996_s2] sm:$0xff]   ;;  %v284_v11 = vlaneseq }
  0x32   :  { %653 = vmatprep.subr.bf16.mxu0 %v848_v0  ;;  %661 = vmatprep.subr.bf16.mxu1 %v848_v0  ;;  %v717_v3 = vld [vmem:[#allocation5 + $0x8] sm:$0xff]   ;;  %v92_v4 = vld [vmem:[%s994_s0] sm:$0x1]  ;;  %v718_v5 = vld [vmem:[#allocation5] sm:$0xff]   ;;  %vm111_vm1 = vcmask 261120   ;;  %vm434_vm2 = vcmask 1043456  }
  0x33   :  { %657 = vmatprep.mubr.msk.bf16.mxu0 %vm849_vm0, %v848_v0  ;;  %665 = vmatprep.mubr.msk.bf16.mxu1 %vm849_vm0, %v848_v0  ;;  %v719_v6 = vld [vmem:[#allocation2] sm:$0xff]   ;;  %v720_v7 = vld [vmem:[%s1001_s7 + $0x8] sm:$0xff]   ;;  %v850_v9 = vmov 1966171168   ;;  %v285_v13 = vshrl.u32 %v284_v11, 7  ;;  %v723_v42 = vld [vmem:[#allocation7] sm:$0xff]  }
  0x34   :  { %654 = vmatpush3.bf16.msra.mxu0 %v715_v1  ;;  %662 = vmatpush3.bf16.msra.mxu1 %v717_v3  ;;  %v721_v8 = vld [vmem:[%s1001_s7] sm:$0xff]   ;;  %v282_v10 = vunpack.c.l.s4 %v850_v9  ;;  %vm390_vm3 = vcmask 64512   ;;  %vm483_vm4 = vcmask 130048   ;;  %s851_s23 = smov [#allocation10]   ;;  %vm594_vm5 = vcmask 254976  }
  0x35   :  { %655 = vmatprep.subr.bf16.mxu0 %v848_v0  ;;  %663 = vmatprep.subr.bf16.mxu1 %v848_v0  ;;  %v301_v23 = vsub.s32 0, %v285_v13  ;;  %v722_v41 = vld [vmem:[#allocation7 + $0x8] sm:$0xff]   ;;  %s602_s24 = sshll.u32 %s851_s23, 4  ;;  %s603_s24 = int_to_ptr.vmem [resolvable:$true] %s602_s24 }
  0x36   :  { %v283_v12 = vunpack.c.0.s8 %v282_v10  ;;  %v430_v43 = vld [vmem:[%s1002_s8] sm:$0xf]  ;;  %p819_p7 = scmp.lt.s32.totalorder %s603_s24, %s603_s24 }
  0x37   :  { %v436_v44 = vsel %vm434_vm2, %v430_v43, 0 }
  0x38   :  { %656 = vmatpush3.bf16.msra.mxu0 %v716_v2  ;;  %664 = vmatpush3.bf16.msra.mxu1 %v718_v5  ;;  %v286_v14 = vsub.s32 %v283_v12, %v285_v13 }
  0x39   :  { %669 = vmatprep.subr.bf16.mxu0 %v848_v0  ;;  %677 = vmatprep.subr.bf16.mxu1 %v848_v0 }
  0x3b   :  { %658 = vmatmul.mubr.msk.bf16.vlgmr.msra.gmra.mxu0 %vm111_vm1, %v92_v4  ;;  %666 = vmatmul.mubr.msk.bf16.vlgmr.msra.gmra.mxu1 %vm111_vm1, %v719_v6 }
  0x3c   :  { %673 = vmatprep.mubr.msk.bf16.mxu0 %vm849_vm0, %v848_v0  ;;  %681 = vmatprep.mubr.msk.bf16.mxu1 %vm849_vm0, %v848_v0 }
  0x3d   :  { %678 = vmatpush3.bf16.msra.mxu1 %v720_v7  ;;  %670 = vmatpush3.bf16.msra.mxu0 %v722_v41 }
  0x3e   :  { %679 = vmatprep.subr.bf16.mxu1 %v848_v0  ;;  %671 = vmatprep.subr.bf16.mxu0 %v848_v0 }
  0x41   :  { %680 = vmatpush3.bf16.msra.mxu1 %v721_v8  ;;  %672 = vmatpush3.bf16.msra.mxu0 %v723_v42 }
  0x42   :  { %691 = vmatprep.subr.bf16.mxu1 %v848_v0  ;;  %685 = vmatprep.subr.bf16.mxu0 %v848_v0 }
  0x44   :  { %674 = vmatmul.mubr.msk.bf16.vlgmr.msra.gmra.mxu0 %vm111_vm1, %v719_v6 }
  0x45   :  { %686 = vmatpush3.bf16.msra.mxu0 %v436_v44  ;;  %687 = vmatprep.mubr.msk.bf16.mxu0 %vm849_vm0, %v848_v0 }
  0x46   :  { %697 = vmatprep.subr.bf16.mxu0 %v848_v0 }
  0xfb   :  { %v149_v15 = vpop.f32.mrf.mxu0  ;;  %v213_v18 = vpop.f32.mrf.mxu1 }
  0xfc   :  { %v277_v16 = vpack.c.bf16 %v149_v15, %v149_v15  ;;  %v278_v35 = vpack.c.bf16 %v213_v18, %v213_v18 }
  0xfd   :  { %v659_v17 = vpop.f32.mrf.mxu0  ;;  %v667_v21 = vpop.f32.mrf.mxu1 }
  0xfe   :  { %v287_v19 = vrot.slane %v277_v16, %v286_v14 }
  0xff   :  { %v152_v20 = vpop.f32.mrf.mxu0  ;;  %v216_v25 = vpop.f32.mrf.mxu1 }
 0x100   :  { %v294_v22 = vrot.slane %v287_v19, %v286_v14  ;;  %v279_v36 = vpack.c.bf16 %v216_v25, %v216_v25 }
 0x101   :  { %v660_v24 = vpop.f32.mrf.mxu0  ;;  %v668_v28 = vpop.f32.mrf.mxu1 }
 0x102   :  { %v296_v26 = vunpack.i.h.s16 %v294_v22  ;;  %v623_v27 = vpack.i.b16 %v294_v22, %v294_v22 }
 0x104   :  { %v298_v29 = vpack.i.b16 %v296_v26, %v296_v26  ;;  %v302_v30 = vrot.slane %v623_v27, %v301_v23  ;;  %v270_v27 = vpop.f32.mrf.mxu0 }
 0x106   :  { %v308_v31 = vpack.i.b16 %v302_v30, %v302_v30  ;;  %v306_v32 = vrot.slane %v298_v29, %v301_v23  ;;  %v675_v28 = vpop.f32.mrf.mxu0 }
 0x108   :  { %v313_v33 = vrot.slane %v308_v31, %v301_v23  ;;  %v315_v34 = vpack.i.b16 %v306_v32, %v306_v32  ;;  %v273_v29 = vpop.f32.mrf.mxu0  ;;  %v724_v31 = vld [vmem:[#allocation8 + $0x8] sm:$0xff]  }
 0x10a   :  { %v320_v37 = vrot.slane %v315_v34, %v301_v23  ;;  %v321_v38 = vmul.bf16 %v313_v33, %v278_v35  ;;  %v676_v30 = vpop.f32.mrf.mxu0 }
 0x10c   :  { %v322_v39 = vmul.bf16 %v320_v37, %v279_v36 }
 0x10e   :  { %v624_v40 = vcombine.low %v321_v38, %v322_v39  ;;  %v482_v39 = vld [vmem:[%s1003_s9] sm:$0x1]  ;;  %s814_s9 = scalar_lea.vmem %s603_s24, 32 }
 0x10f   :  { %p815_p6 = scmp.ne.s32.totalorder %s603_s24, %s814_s9  ;;  %p820_p8 = scmp.lt.s32.totalorder %s814_s9, %s814_s9 }
 0x110   :  { %682 = vmatmul.mubr.msk.bf16.vlgmr.msra.gmra.mxu1 %vm111_vm1, %v624_v40  ;;  %v725_v40 = vld [vmem:[#allocation8] sm:$0xff]  }
 0x111   :  { %693 = vmatprep.mubr.msk.bf16.mxu1 %vm849_vm0, %v848_v0  ;;  %p821_p9 = por %p820_p8, %p819_p7 }
 0x113   :  { %p822_p10 = pnand %p821_p9, %p815_p6 }
 0x1d0   :  { %v381_v45 = vpop.f32.mrf.mxu1 }
 0x1d1   :  { %v388_v46 = vmul.f32 0.5, %v381_v45  ;;  %v630_v45 = vld [vmem:[%s1000_s6] ss:$0 sm:$0xff] }
 0x1d2   :  { %v683_v47 = vpop.f32.mrf.mxu1 }
 0x1d3   :  { %v391_v48 = vsel %vm390_vm3, %v388_v46, -inf }
 0x1d4   :  { %v392_v49 = vrot.slane %v391_v48, 4  ;;  %v384_v50 = vpop.f32.mrf.mxu1 }
 0x1d5   :  { %v389_v51 = vmul.f32 0.5, %v384_v50 }
 0x1d6   :  { %v393_v52 = vmax.f32 %v391_v48, %v392_v49  ;;  %v684_v53 = vpop.f32.mrf.mxu1 }
 0x1d7   :  { %v398_v54 = vsel %vm390_vm3, %v389_v51, -inf }
 0x1d8   :  { %v394_v55 = vrot.slane %v393_v52, 2  ;;  %v399_v56 = vrot.slane %v398_v54, 4 }
 0x1da   :  { %v395_v57 = vmax.f32 %v393_v52, %v394_v55  ;;  %v400_v58 = vmax.f32 %v398_v54, %v399_v56 }
 0x1dc   :  { %v396_v59 = vrot.slane %v395_v57, 1  ;;  %v401_v60 = vrot.slane %v400_v58, 2 }
 0x1de   :  { %v397_v61 = vmax.f32 %v395_v57, %v396_v59  ;;  %v402_v62 = vmax.f32 %v400_v58, %v401_v60 }
 0x1e0   :  { %v405_v63 = vsub.f32 %v388_v46, %v397_v61  ;;  %v403_v1 = vrot.slane %v402_v62, 1 }
 0x1e2   :  { %v407_v2 = vmul.f32 1.442695, %v405_v63  ;;  %v404_v3 = vmax.f32 %v402_v62, %v403_v1 }
 0x1e4   :  { %726 = vpow2.f32 %v407_v2  ;;  %v406_v4 = vsub.f32 %v389_v51, %v404_v3 }
 0x1e6   :  { %v409_v5 = vmul.f32 1.442695, %v406_v4 }
 0x1e8   :  { %728 = vpow2.f32 %v409_v5 }
 0x1f1   :  { %v727_v6 = vpop.eup %726 }
 0x1f2   :  { %v411_v7 = vsel %vm390_vm3, %v727_v6, 0.0 }
 0x1f3   :  { %v412_v8 = vrot.slane %v411_v7, 4 }
 0x1f5   :  { %v729_v9 = vpop.eup %728  ;;  %v413_v10 = vadd.f32 %v412_v8, %v411_v7 }
 0x1f6   :  { %v418_v11 = vsel %vm390_vm3, %v729_v9, 0.0 }
 0x1f7   :  { %v414_v12 = vrot.slane %v413_v10, 2  ;;  %v419_v13 = vrot.slane %v418_v11, 4 }
 0x1f9   :  { %v415_v14 = vadd.f32 %v414_v12, %v413_v10  ;;  %v420_v15 = vadd.f32 %v419_v13, %v418_v11 }
 0x1fb   :  { %v416_v16 = vrot.slane %v415_v14, 1  ;;  %v421_v17 = vrot.slane %v420_v15, 2 }
 0x1fd   :  { %v417_v18 = vadd.f32 %v416_v16, %v415_v14  ;;  %v422_v19 = vadd.f32 %v421_v17, %v420_v15 }
 0x1ff   :  { %v423_v20 = vrot.slane %v422_v19, 1  ;;  %730 = vrcp.f32 %v417_v18 }
 0x201   :  { %v424_v21 = vadd.f32 %v423_v20, %v422_v19 }
 0x203   :  { %732 = vrcp.f32 %v424_v21 }
 0x20c   :  { %v731_v22 = vpop.eup %730 }
 0x20d   :  { %v427_v24 = vmul.f32 %v731_v22, %v727_v6 }
 0x210   :  { %v733_v23 = vpop.eup %732 }
 0x211   :  { %v428_v25 = vmul.f32 %v733_v23, %v729_v9 }
 0x213   :  { %v429_v26 = vpack.c.bf16 %v428_v25, %v427_v24 }
 0x215   :  { %688 = vmatmul.mubr.msk.bf16.vlgmr.msra.gmra.mxu0 %vm390_vm3, %v429_v26 }
 0x216   :  { %701 = vmatprep.mubr.msk.bf16.mxu0 %vm849_vm0, %v848_v0  ;;  %698 = vmatpush3.bf16.msra.mxu0 %v724_v31 }
 0x217   :  { %699 = vmatprep.subr.bf16.mxu0 %v848_v0 }
 0x21a   :  { %700 = vmatpush3.bf16.msra.mxu0 %v725_v40 }
 0x2d5   :  { %v472_v32 = vpop.f32.mrf.mxu0 }
 0x2d6   :  { %v479_v35 = vmul.f32 %v472_v32, %v270_v27 }
 0x2d7   :  { %v689_v33 = vpop.f32.mrf.mxu0 }
 0x2d9   :  { %v475_v34 = vpop.f32.mrf.mxu0 }
 0x2da   :  { %v480_v36 = vmul.f32 %v475_v34, %v273_v29 }
 0x2db   :  { %v690_v37 = vpop.f32.mrf.mxu0 }
 0x2dc   :  { %v481_v38 = vpack.c.bf16 %v480_v36, %v479_v35 }
 0x2de   :  { %692 = vmatpush3.bf16.msra.mxu1 %v481_v38 }
 0x2e1   :  { %694 = vmatmul.mubr.msk.bf16.vlgmr.msra.gmra.mxu1 %vm483_vm4, %v482_v39 }
 0x3a1   :  { %v521_v41 = vpop.f32.mrf.mxu1 }
 0x3a2   :  { %v527_v42 = vpack.c.bf16 %v521_v41, %v521_v41 }
 0x3a3   :  { %v695_v43 = vpop.f32.mrf.mxu1 }
 0x3a4   :  { %702 = vmatmul.mubr.msk.bf16.vlgmr.msra.gmra.mxu0 %vm111_vm1, %v527_v42 }
 0x3a5   :  { %v524_v0 = vpop.f32.mrf.mxu1 }
 0x3a7   :  { %v696_v44 = vpop.f32.mrf.mxu1 }
 0x464   :  { %v588_v46 = vpop.f32.mrf.mxu0 }
 0x465   :  { %v589_v47 = vadd.f32 %v630_v45, %v588_v46 }
 0x466   :  { %v703_v48 = vpop.f32.mrf.mxu0 }
 0x467   :  { %595 = vst.msk [vmem:[#allocation10] sm:$0x3] %vm594_vm5, %v589_v47 }
 0x468   :  { %v591_v49 = vpop.f32.mrf.mxu0 }
 0x469   :  { %825 = shalt.err (!%p822_p10)
}
 0x46a   :  { %605 = dma.vmem_to_hbm [thread:$0]  %s603_s24, 32, %s1004_s10, [#allocation4]   ;;  %v704_v50 = vpop.f32.mrf.mxu0 }
 0x46b   :  { %840 = dma.done.wait [#allocation4], 32  }
 0x46c   :  { %841 = vsyncadd [#allocation4], 4294967264 }
 0x46d   :  { %609 = vsyncpa [#allocation3], 1 }
 0x46e   :  { %610 = vsyncpa [#allocation6], 1 }
 0x46f   :  { %611 = vsyncpa [#allocation9], 1 }
 0x470   :  { %612 = vsyncpa [#allocation4], 1 }

</bundles_post_ra>
